<compile_context>
chip_gen: v7x
topology: tpu7x:2x2x1
jax: 0.10.0
libtpu: 0.0.40
codegen_flags: <defaults>
</compile_context>

<pallas_src>
import jax
import jax.numpy as jnp
from jax.experimental import pallas as pl
from jax.experimental.pallas import tpu as pltpu


def _cast_kernel(x_ref, o_ref):
    # Elementwise cast on the VPU: float -> int, truncation toward zero
    # (matches torch.Tensor.long() for in-range finite values).
    o_ref[...] = x_ref[...].astype(o_ref.dtype)


def cast_to_long(x):
    """ONNX Cast(to=7): elementwise cast to (emulated) int64.

    Returns an int32 tensor with the same shape as `x`.
    """
    orig_shape = x.shape
    n_elems = x.size
    if n_elems == 0:
        return jnp.zeros(orig_shape, dtype=jnp.int32)

    # Pick the widest lane-dense column count that divides the flat length so
    # no padding copy is needed (wide lanes -> long unmasked vst streams and
    # fewer DMA descriptors).
    lane = None
    for c in (1024, 512, 256, 128):
        if n_elems % c == 0:
            lane = c
            break

    n_pad = 0
    x_flat = jnp.reshape(x, (-1,))
    if lane is None:
        # Fallback for odd sizes: pad only up to the next multiple of 128.
        lane = 128
        n_pad = (-n_elems) % lane
        x_flat = jnp.concatenate(
            [x_flat, jnp.zeros((n_pad,), dtype=x.dtype)])

    rows = x_flat.size // lane
    x2d = jnp.reshape(x_flat, (rows, lane))

    # ~2 MiB of f32 per input block. With double-buffered input + output the
    # peak VMEM footprint is ~8 MiB: inside the 16 MiB scoped default on v5e
    # and far below v7x's 64 MiB physical VMEM, while big enough that the
    # ~0.35 us per-grid-step overhead is negligible (>=85% of HBM roofline).
    max_block_elems = 512 * 1024
    tile_rows = max(8, max_block_elems // lane)  # 512..4096 rows, all %8 == 0
    if rows <= tile_rows:
        # Full-extent block for small inputs (also satisfies the (8,128) rule
        # when rows is not a multiple of 8).
        tile_rows = rows

    grid = (pl.cdiv(rows, tile_rows),)  # ragged last block is masked by Pallas

    # f32 read + int32 write per element.
    cost = pl.CostEstimate(
        flops=0,
        transcendentals=0,
        bytes_accessed=int(x2d.size) * (x2d.dtype.itemsize + 4),
    )

    out2d = pl.pallas_call(
        _cast_kernel,
        out_shape=jax.ShapeDtypeStruct((rows, lane), jnp.int32),
        grid_spec=pltpu.PrefetchScalarGridSpec(
            num_scalar_prefetch=0,
            grid=grid,
            in_specs=[pl.BlockSpec((tile_rows, lane), lambda i: (i, 0))],
            out_specs=pl.BlockSpec((tile_rows, lane), lambda i: (i, 0)),
        ),
        compiler_params=pltpu.CompilerParams(
            dimension_semantics=("parallel",)),
        cost_estimate=cost,
    )(x2d)

    out_flat = jnp.reshape(out2d, (-1,))
    if n_pad:
        out_flat = out_flat[:n_elems]
    return jnp.reshape(out_flat, orig_shape)


if __name__ == "__main__":
    key = jax.random.PRNGKey(0)
    # Small NCHW-style input consistent with typical conv-layout tensors.
    x = jax.random.normal(key, (2, 4, 16, 16), dtype=jnp.float32) * 10.0

    y = cast_to_long(x)
    jax.block_until_ready(y)

    # Reference check: jnp truncating cast (same semantics as torch .long()).
    y_ref = x.astype(jnp.int32)
    assert y.shape == x.shape
    assert y.dtype == jnp.int32
    assert bool(jnp.all(y == y_ref))

    # Extra check on a size that exercises the non-1024 lane path (rows > 1).
    x2 = jax.random.normal(key, (3, 5, 8, 16), dtype=jnp.float32) * 100.0
    y2 = cast_to_long(x2)
    jax.block_until_ready(y2)
    assert bool(jnp.all(y2 == x2.astype(jnp.int32)))

    print("KERNEL_OK")
</pallas_src>

<mosaic_0001>
module attributes {stable_mosaic.version = 11 : i64} {
  func.func @_cast_kernel(%arg0: i32, %arg1: memref<2x1024xf32, #tpu.memory_space<vmem>>, %arg2: memref<2x1024xi32, #tpu.memory_space<vmem>>) attributes {dimension_semantics = [#tpu.dimension_semantics<parallel>], iteration_bounds = array<i64: 1>, scalar_prefetch = 0 : i64, scratch_operands = 0 : i64, tpu.core_type = #tpu.core_type<tc>, window_params = [{transform_indices = @transform_0, window_bounds = array<i64: 2, 1024>}, {transform_indices = @transform_1, window_bounds = array<i64: 2, 1024>}]} {
    %c0 = arith.constant 0 : index
    %c0_0 = arith.constant 0 : index
    %0 = vector.load %arg1[%c0, %c0_0] : memref<2x1024xf32, #tpu.memory_space<vmem>>, vector<2x1024xf32>
    %1 = arith.fptosi %0 : vector<2x1024xf32> to vector<2x1024xi32>
    %c0_1 = arith.constant 0 : index
    %c0_2 = arith.constant 0 : index
    %2 = vector.load %arg2[%c0_1, %c0_2] : memref<2x1024xi32, #tpu.memory_space<vmem>>, vector<2x1024xi32>
    tpu.vector_store %arg2[%c0_1, %c0_2], %1 {strides = array<i32>} : memref<2x1024xi32, #tpu.memory_space<vmem>>, vector<2x1024xi32>,
    return
  }
  func.func @transform_0(%arg0: i32) -> (i32, i32) {
    %c0_i32 = arith.constant 0 : i32
    %c0_i32_0 = arith.constant 0 : i32
    return %arg0, %c0_i32 : i32, i32
  }
  func.func @transform_1(%arg0: i32) -> (i32, i32) {
    %c0_i32 = arith.constant 0 : i32
    %c0_i32_0 = arith.constant 0 : i32
    return %arg0, %c0_i32 : i32, i32
  }
}

</mosaic_0001>

<bundles_post_ra>
// kernel: tpu_custom_call.1
= control target key start
LH: loop header
LB: loop body
LE: loop exit
PB: predicated region body
PF: predicated region fallthrough
CT: control target
= control target key end

     0   :  { %6 = vsyncpa [#allocation3], 0  ;;  %s132_s0 = inlined_call_operand.hbm [shape: f32[2,1024], index: 0, kind: input, shape index: {}]   ;;  %s133_s1 = inlined_call_operand.hbm [shape: s32[2,1024], index: 1, kind: output, shape index: {}]  }
   0x1   :  { %7 = vsyncpa [#allocation4], 0  ;;  %s96_s6 = smov [#allocation2]   ;;  %s48_s10 = scalar_lea.hbm %s132_s0, 256 }
   0x2   :  { %s14_s7 = sshll.u32 %s96_s6, 4  ;;  %p49_p0 = scmp.ne.s32.totalorder %s132_s0, %s48_s10  ;;  %s15_s7 = int_to_ptr.vmem [resolvable:$true] %s14_s7 }
   0x3   :  { %p52_p1 = scmp.lt.u32.totalorder %s48_s10, %s132_s0 }
   0x5   :  { %p54_p2 = pnand %p52_p1, %p49_p0 }
   0x7   :  { %57 = shalt.err (!%p54_p2)
}
   0x8   :  { %s58_s15 = scalar_lea.vmem %s15_s7, 256  ;;  %p63_p4 = scmp.lt.s32.totalorder %s15_s7, %s15_s7 }
   0x9   :  { %p59_p3 = scmp.ne.s32.totalorder %s15_s7, %s58_s15  ;;  %p64_p5 = scmp.lt.s32.totalorder %s58_s15, %s58_s15 }
   0xb   :  { %p65_p6 = por %p64_p5, %p63_p4 }
   0xd   :  { %p66_p7 = pnand %p65_p6, %p59_p3 }
   0xf   :  { %69 = shalt.err (!%p66_p7)
}
  0x10   :  { %17 = dma.hbm_to_vmem [thread:$0]  %s132_s0, 256, %s15_s7, [#allocation3]  }
  0x11   :  { %92 = dma.done.wait [#allocation3], 256  }
  0x12   :  { %93 = vsyncadd [#allocation3], 4294967040  ;;  %v21_v0 = vld [vmem:[#allocation2] sm:$0xff]  ;;  %v22_v1 = vld [vmem:[#allocation2 + $0x8] sm:$0xff]  ;;  %s97_s18 = smov [#allocation5]  }
  0x13   :  { %s33_s19 = sshll.u32 %s97_s18, 4  ;;  %v42_v2 = vtrunc.f32 %v21_v0  ;;  %v44_v3 = vtrunc.f32 %v22_v1  ;;  %s34_s19 = int_to_ptr.vmem [resolvable:$true] %s33_s19 }
  0x14   :  { %s70_s20 = scalar_lea.vmem %s34_s19, 256  ;;  %p75_p9 = scmp.lt.s32.totalorder %s34_s19, %s34_s19 }
  0x15   :  { %v43_v4 = vcvt.f32.s32 %v42_v2  ;;  %v45_v5 = vcvt.f32.s32 %v44_v3  ;;  %p71_p8 = scmp.ne.s32.totalorder %s34_s19, %s70_s20  ;;  %p76_p10 = scmp.lt.s32.totalorder %s70_s20, %s70_s20 }
  0x17   :  { %25 = vst [vmem:[#allocation5] sm:$0xff] %v43_v4  ;;  %26 = vst [vmem:[#allocation5 + $0x8] sm:$0xff] %v45_v5  ;;  %p77_p11 = por %p76_p10, %p75_p9 }
  0x19   :  { %p78_p12 = pnand %p77_p11, %p71_p8 }
  0x1b   :  { %81 = shalt.err (!%p78_p12)
}
  0x1c   :  { %s82_s22 = scalar_lea.hbm %s133_s1, 256 }
  0x1d   :  { %p83_p13 = scmp.ne.s32.totalorder %s133_s1, %s82_s22  ;;  %p86_p0 = scmp.lt.u32.totalorder %s82_s22, %s133_s1 }
  0x1f   :  { %p88_p1 = pnand %p86_p0, %p83_p13 }
  0x21   :  { %91 = shalt.err (!%p88_p1)
}
  0x22   :  { %36 = dma.vmem_to_hbm [thread:$0]  %s34_s19, 256, %s133_s1, [#allocation4]  }
  0x23   :  { %94 = dma.done.wait [#allocation4], 256  }
  0x24   :  { %95 = vsyncadd [#allocation4], 4294967040 }
  0x25   :  { %40 = vsyncpa [#allocation3], 1 }
  0x26   :  { %41 = vsyncpa [#allocation4], 1 }

</bundles_post_ra>
